<compile_context>
chip_gen: v7x
topology: tpu7x:2x2x1
jax: 0.10.0
libtpu: 0.0.40
codegen_flags: <defaults>
</compile_context>

<pallas_src>
import functools

import jax
import jax.numpy as jnp
from jax.experimental import pallas as pl
from jax.experimental.pallas import tpu as pltpu

EPS = 1e-6
LANE = 128                      # vreg lane width; last dim of flattened slab
ROW_TILE = 4096                 # 2 MiB per f32 input block
NUM_CORES = 2                   # v7x TensorCores; harmless on v5e/v6e
VMEM_LIMIT = 32 * 1024 * 1024   # raise v5e's 16 MiB default; safe on v7x (64 MiB)


def _iou_small_kernel(p_ref, t_ref, inter_ref, total_ref):
    """Whole problem resident in one VMEM block; single sublane reduce."""
    p = jnp.clip(p_ref[...].astype(jnp.float32), 0.0, 1.0)
    t = t_ref[...].astype(jnp.float32)
    inter_ref[...] = jnp.sum(p * t, axis=0, keepdims=True)   # (1, 128)
    total_ref[...] = jnp.sum(p + t, axis=0, keepdims=True)   # (1, 128)


def _iou_tiled_kernel(p_ref, t_ref, inter_ref, total_ref, *,
                      rows, row_tile, steps_per_core, num_tiles, n_split):
    c = pl.program_id(0)          # TensorCore split ("parallel")
    i = pl.program_id(1)          # row-tile step within this core ("arbitrary")
    global_tile = c * steps_per_core + i

    @pl.when(i == 0)
    def _init():
        inter_ref[...] = jnp.zeros_like(inter_ref)
        total_ref[...] = jnp.zeros_like(total_ref)

    p = jnp.clip(p_ref[...].astype(jnp.float32), 0.0, 1.0)
    t = t_ref[...].astype(jnp.float32)

    def accumulate(pp, tt):
        # (row_tile,128) -> (row_tile//8, 8, 128); leading-axis sum lowers to
        # pure elementwise vreg adds into a single-vreg accumulator (no XLU,
        # no full-tile accumulator read-modify-write).
        inter_ref[0] += (pp * tt).reshape(row_tile // 8, 8, LANE).sum(axis=0)
        total_ref[0] += (pp + tt).reshape(row_tile // 8, 8, LANE).sum(axis=0)

    has_partial = (rows % row_tile) != 0
    has_dup = n_split * steps_per_core > num_tiles   # clamped duplicate tiles
    if has_partial or has_dup:
        first_masked = num_tiles - 1 if has_partial else num_tiles

        @pl.when(global_tile < first_masked)
        def _full():
            accumulate(p, t)

        @pl.when(global_tile >= first_masked)
        def _tail():
            start = global_tile * row_tile
            row_idx = jax.lax.broadcasted_iota(jnp.int32, (row_tile, 1), 0)
            mask = (row_idx + start) < rows          # (row_tile, 1) row mask
            accumulate(jnp.where(mask, p, 0.0), jnp.where(mask, t, 0.0))
    else:
        accumulate(p, t)


def _finish(inter_parts, total_parts):
    inter = jnp.sum(inter_parts)
    total = jnp.sum(total_parts)
    union = total - inter
    return jnp.float32(1.0) - (inter + EPS) / (union + EPS)


def iou_loss(preds, targets):
    assert preds.shape == targets.shape
    n = preds.size

    p_flat = jnp.ravel(preds)
    t_flat = jnp.ravel(targets)

    # Pad to a lane multiple only (<= 127 zeros); exact since clamp(0) = 0.
    pad = (-n) % LANE
    if pad:
        p_flat = jnp.pad(p_flat, (0, pad))
        t_flat = jnp.pad(t_flat, (0, pad))
    rows = (n + pad) // LANE

    p2d = p_flat.reshape(rows, LANE)
    t2d = t_flat.reshape(rows, LANE)

    cost = pl.CostEstimate(
        flops=6 * n, transcendentals=0,
        bytes_accessed=n * (preds.dtype.itemsize + targets.dtype.itemsize))

    if rows <= ROW_TILE:
        inter_parts, total_parts = pl.pallas_call(
            _iou_small_kernel,
            out_shape=(jax.ShapeDtypeStruct((1, LANE), jnp.float32),
                       jax.ShapeDtypeStruct((1, LANE), jnp.float32)),
            in_specs=[pl.BlockSpec((rows, LANE), lambda: (0, 0)),
                      pl.BlockSpec((rows, LANE), lambda: (0, 0))],
            out_specs=(pl.BlockSpec((1, LANE), lambda: (0, 0)),
                       pl.BlockSpec((1, LANE), lambda: (0, 0))),
            compiler_params=pltpu.CompilerParams(vmem_limit_bytes=VMEM_LIMIT),
            cost_estimate=cost,
        )(p2d, t2d)
        return _finish(inter_parts, total_parts)

    num_tiles = pl.cdiv(rows, ROW_TILE)
    # 2-core split (v7x) only when the rectangular grid wastes <= ~1 tile in 8;
    # on single-TC chips the "parallel" axis simply runs sequentially.
    n_split = NUM_CORES if (num_tiles % NUM_CORES == 0 or num_tiles >= 8) else 1
    steps_per_core = pl.cdiv(num_tiles, n_split)

    if n_split * steps_per_core > num_tiles:
        def tile_idx(c, i):
            return jnp.minimum(c * steps_per_core + i, num_tiles - 1)
    else:
        def tile_idx(c, i):
            return c * steps_per_core + i

    kernel = functools.partial(
        _iou_tiled_kernel, rows=rows, row_tile=ROW_TILE,
        steps_per_core=steps_per_core, num_tiles=num_tiles, n_split=n_split)

    inter_parts, total_parts = pl.pallas_call(
        kernel,
        out_shape=(jax.ShapeDtypeStruct((n_split, 8, LANE), jnp.float32),
                   jax.ShapeDtypeStruct((n_split, 8, LANE), jnp.float32)),
        grid_spec=pltpu.PrefetchScalarGridSpec(
            num_scalar_prefetch=0,
            grid=(n_split, steps_per_core),
            in_specs=[
                pl.BlockSpec((ROW_TILE, LANE), lambda c, i: (tile_idx(c, i), 0)),
                pl.BlockSpec((ROW_TILE, LANE), lambda c, i: (tile_idx(c, i), 0)),
            ],
            out_specs=(
                pl.BlockSpec((1, 8, LANE), lambda c, i: (c, 0, 0)),
                pl.BlockSpec((1, 8, LANE), lambda c, i: (c, 0, 0)),
            ),
        ),
        compiler_params=pltpu.CompilerParams(
            dimension_semantics=("parallel", "arbitrary"),
            vmem_limit_bytes=VMEM_LIMIT,
        ),
        cost_estimate=cost,
    )(p2d, t2d)
    return _finish(inter_parts, total_parts)


def iou_loss_ref(preds, targets, eps=EPS):
    p = jnp.clip(preds.astype(jnp.float32), 0.0, 1.0)
    t = targets.astype(jnp.float32)
    inter = jnp.sum(p * t)
    union = jnp.sum(p + t) - inter
    return 1.0 - (inter + eps) / (union + eps)


if __name__ == "__main__":
    key = jax.random.PRNGKey(0)
    k1, k2, k3, k4 = jax.random.split(key, 4)

    # Small NCHW inputs consistent with the module's segmentation use.
    preds = jax.random.uniform(k1, (2, 4, 16, 16), jnp.float32, -0.2, 1.2)
    targets = (jax.random.uniform(k2, (2, 4, 16, 16), jnp.float32) > 0.5).astype(
        jnp.float32)

    out = jax.block_until_ready(iou_loss(preds, targets))
    ref = iou_loss_ref(preds, targets)
    assert jnp.allclose(out, ref, rtol=1e-5, atol=1e-6), (out, ref)

    # Exercise the tiled / two-core path (lane padding + partial last tile).
    big_shape = (2, 4, 260, 257)
    preds_b = jax.random.uniform(k3, big_shape, jnp.float32, -0.2, 1.2)
    targets_b = (jax.random.uniform(k4, big_shape, jnp.float32) > 0.5).astype(
        jnp.float32)
    out_b = jax.block_until_ready(iou_loss(preds_b, targets_b))
    ref_b = iou_loss_ref(preds_b, targets_b)
    assert jnp.allclose(out_b, ref_b, rtol=1e-4, atol=1e-6), (out_b, ref_b)

    print("KERNEL_OK")
</pallas_src>

<mosaic_0001>
module attributes {stable_mosaic.version = 11 : i64} {
  func.func @_iou_small_kernel(%arg0: memref<16x128xf32, #tpu.memory_space<vmem>>, %arg1: memref<16x128xf32, #tpu.memory_space<vmem>>, %arg2: memref<1x128xf32, #tpu.memory_space<vmem>>, %arg3: memref<1x128xf32, #tpu.memory_space<vmem>>) attributes {dimension_semantics = [], scalar_prefetch = 0 : i64, scratch_operands = 0 : i64, tpu.core_type = #tpu.core_type<tc>} {
    %c0 = arith.constant 0 : index
    %c0_0 = arith.constant 0 : index
    %0 = vector.load %arg0[%c0, %c0_0] : memref<16x128xf32, #tpu.memory_space<vmem>>, vector<16x128xf32>
    %cst = arith.constant 0.000000e+00 : f32
    %cst_1 = arith.constant 1.000000e+00 : f32
    %1 = vector.broadcast %cst : f32 to vector<16x128xf32>
    %2 = arith.maximumf %1, %0 : vector<16x128xf32>
    %3 = vector.broadcast %cst_1 : f32 to vector<16x128xf32>
    %4 = arith.minimumf %3, %2 : vector<16x128xf32>
    %c0_2 = arith.constant 0 : index
    %c0_3 = arith.constant 0 : index
    %5 = vector.load %arg1[%c0_2, %c0_3] : memref<16x128xf32, #tpu.memory_space<vmem>>, vector<16x128xf32>
    %6 = arith.mulf %4, %5 : vector<16x128xf32>
    %cst_4 = arith.constant dense<0.000000e+00> : vector<128xf32>
    %7 = vector.multi_reduction <add>, %6, %cst_4 [0] : vector<16x128xf32> to vector<128xf32>
    %8 = vector.shape_cast %7 : vector<128xf32> to vector<1x128xf32>
    %c0_5 = arith.constant 0 : index
    %c0_6 = arith.constant 0 : index
    %9 = vector.load %arg2[%c0_5, %c0_6] : memref<1x128xf32, #tpu.memory_space<vmem>>, vector<1x128xf32>
    tpu.vector_store %arg2[%c0_5, %c0_6], %8 {strides = array<i32>} : memref<1x128xf32, #tpu.memory_space<vmem>>, vector<1x128xf32>,
    %10 = arith.addf %4, %5 : vector<16x128xf32>
    %cst_7 = arith.constant dense<0.000000e+00> : vector<128xf32>
    %11 = vector.multi_reduction <add>, %10, %cst_7 [0] : vector<16x128xf32> to vector<128xf32>
    %12 = vector.shape_cast %11 : vector<128xf32> to vector<1x128xf32>
    %c0_8 = arith.constant 0 : index
    %c0_9 = arith.constant 0 : index
    %13 = vector.load %arg3[%c0_8, %c0_9] : memref<1x128xf32, #tpu.memory_space<vmem>>, vector<1x128xf32>
    tpu.vector_store %arg3[%c0_8, %c0_9], %12 {strides = array<i32>} : memref<1x128xf32, #tpu.memory_space<vmem>>, vector<1x128xf32>,
    return
  }
}

</mosaic_0001>

<bundles_post_ra>
// kernel: tpu_custom_call.1
= control target key start
LH: loop header
LB: loop body
LE: loop exit
PB: predicated region body
PF: predicated region fallthrough
CT: control target
= control target key end

     0   :  { %9 = vsyncpa [#allocation3], 0  ;;  %s285_s0 = inlined_call_operand.hbm [shape: f32[16,128], index: 0, kind: input, shape index: {}]   ;;  %s286_s1 = inlined_call_operand.hbm [shape: f32[16,128], index: 1, kind: input, shape index: {}]   ;;  %s287_s2 = inlined_call_operand.hbm [shape: f32[1,128], index: 2, kind: output, shape index: {0}]   ;;  %s288_s3 = inlined_call_operand.hbm [shape: f32[1,128], index: 3, kind: output, shape index: {1}]  }
   0x1   :  { %10 = vsyncpa [#allocation6], 0 }
   0x2   :  { %11 = vsyncpa [#allocation4], 0 }
   0x3   :  { %12 = vsyncpa [#allocation9], 0  ;;  %s203_s12 = smov [#allocation2]   ;;  %s107_s16 = scalar_lea.hbm %s285_s0, 256 }
   0x4   :  { %s18_s13 = sshll.u32 %s203_s12, 4  ;;  %p108_p0 = scmp.ne.s32.totalorder %s285_s0, %s107_s16  ;;  %s19_s13 = int_to_ptr.vmem [resolvable:$true] %s18_s13 }
   0x5   :  { %p111_p1 = scmp.lt.u32.totalorder %s107_s16, %s285_s0 }
   0x7   :  { %p113_p2 = pnand %p111_p1, %p108_p0 }
   0x9   :  { %116 = shalt.err (!%p113_p2)
}
   0xa   :  { %s117_s21 = scalar_lea.vmem %s19_s13, 256  ;;  %p122_p4 = scmp.lt.s32.totalorder %s19_s13, %s19_s13 }
   0xb   :  { %p118_p3 = scmp.ne.s32.totalorder %s19_s13, %s117_s21  ;;  %p123_p5 = scmp.lt.s32.totalorder %s117_s21, %s117_s21 }
   0xd   :  { %p124_p6 = por %p123_p5, %p122_p4 }
   0xf   :  { %p125_p7 = pnand %p124_p6, %p118_p3 }
  0x11   :  { %128 = shalt.err (!%p125_p7)
}
  0x12   :  { %s204_s22 = smov 128   ;;  %s205_s23 = smov 8  }
  0x13   :  { %24 = dma.hbm_to_vmem [thread:$0]  %s285_s0, 256, %s19_s13, [#allocation3], %s204_s22, %s204_s22, %s205_s23  }
  0x14   :  { %s206_s26 = smov [#allocation5]   ;;  %s129_s30 = scalar_lea.hbm %s286_s1, 256 }
  0x15   :  { %s30_s27 = sshll.u32 %s206_s26, 4  ;;  %p130_p8 = scmp.ne.s32.totalorder %s286_s1, %s129_s30  ;;  %s31_s27 = int_to_ptr.vmem [resolvable:$true] %s30_s27 }
  0x16   :  { %p133_p9 = scmp.lt.u32.totalorder %s129_s30, %s286_s1 }
  0x18   :  { %p135_p10 = pnand %p133_p9, %p130_p8 }
  0x1a   :  { %138 = shalt.err (!%p135_p10)
}
  0x1b   :  { %s139_s8 = scalar_lea.vmem %s31_s27, 256  ;;  %p144_p12 = scmp.lt.s32.totalorder %s31_s27, %s31_s27 }
  0x1c   :  { %p140_p11 = scmp.ne.s32.totalorder %s31_s27, %s139_s8  ;;  %p145_p13 = scmp.lt.s32.totalorder %s139_s8, %s139_s8 }
  0x1e   :  { %p146_p0 = por %p145_p13, %p144_p12 }
  0x20   :  { %p147_p1 = pnand %p146_p0, %p140_p11 }
  0x22   :  { %150 = shalt.err (!%p147_p1)
}
  0x23   :  { %36 = dma.hbm_to_vmem [thread:$0]  %s286_s1, 256, %s31_s27, [#allocation6], %s204_s22, %s204_s22, %s205_s23  }
  0x24   :  { %195 = dma.done.wait [#allocation3], 256  }
  0x25   :  { %196 = vsyncadd [#allocation3], 4294967040 }
  0x26   :  { %197 = dma.done.wait [#allocation6], 256  }
  0x27   :  { %198 = vsyncadd [#allocation6], 4294967040  ;;  %v43_v0 = vld [vmem:[#allocation2] sm:$0xff]  ;;  %v44_v1 = vld [vmem:[#allocation2 + $0x8] sm:$0xff]  ;;  %s207_s1 = smov [#allocation7]   ;;  %s208_s11 = smov [#allocation8]  }
  0x28   :  { %v45_v2 = vmax.f32 %v43_v0, 0.0  ;;  %v46_v3 = vmax.f32 %v44_v1, 0.0  ;;  %v49_v4 = vld [vmem:[#allocation5] sm:$0xff]  ;;  %v50_v5 = vld [vmem:[#allocation5 + $0x8] sm:$0xff]  ;;  %s77_s10 = sshll.u32 %s207_s1, 4  ;;  %s87_s12 = sshll.u32 %s208_s11, 4  ;;  %s78_s10 = int_to_ptr.vmem [resolvable:$true] %s77_s10  ;;  %s253_s12 = int_to_ptr.vmem [resolvable:$true] %s87_s12 }
  0x29   :  { %s151_s13 = scalar_lea.vmem %s78_s10, 16  ;;  %s155_s14 = scalar_lea.vmem %s78_s10, 32 }
  0x2a   :  { %v47_v6 = vmin.f32 %v45_v2, 1.0  ;;  %v48_v7 = vmin.f32 %v46_v3, 1.0  ;;  %p152_p2 = scmp.ne.s32.totalorder %s78_s10, %s151_s13  ;;  %p156_p3 = scmp.lt.s32.totalorder %s78_s10, %s78_s10 }
  0x2b   :  { %p157_p4 = scmp.lt.s32.totalorder %s155_s14, %s151_s13 }
  0x2c   :  { %v51_v8 = vmul.f32 %v49_v4, %v47_v6  ;;  %v52_v9 = vmul.f32 %v50_v5, %v48_v7  ;;  %v61_v10 = vadd.f32 %v49_v4, %v47_v6  ;;  %v62_v11 = vadd.f32 %v50_v5, %v48_v7 }
  0x2d   :  { %p158_p5 = por %p157_p4, %p156_p3 }
  0x2e   :  { %v53_v12 = vadd.f32 %v52_v9, %v51_v8  ;;  %v63_v13 = vadd.f32 %v62_v11, %v61_v10 }
  0x2f   :  { %p159_p6 = pnand %p158_p5, %p152_p2 }
  0x30   :  { %v54_v14 = vrot.slane %v53_v12, 4  ;;  %v64_v15 = vrot.slane %v63_v13, 4 }
  0x32   :  { %v55_v16 = vadd.f32 %v54_v14, %v53_v12  ;;  %v65_v17 = vadd.f32 %v64_v15, %v63_v13 }
  0x34   :  { %v56_v18 = vrot.slane %v55_v16, 2  ;;  %v66_v19 = vrot.slane %v65_v17, 2 }
  0x36   :  { %v57_v20 = vadd.f32 %v56_v18, %v55_v16  ;;  %v67_v21 = vadd.f32 %v66_v19, %v65_v17 }
  0x38   :  { %v58_v22 = vrot.slane %v57_v20, 1  ;;  %v68_v23 = vrot.slane %v67_v21, 1 }
  0x3a   :  { %v59_v24 = vadd.f32 %v58_v22, %v57_v20  ;;  %v69_v25 = vadd.f32 %v68_v23, %v67_v21 }
  0x3c   :  { %60 = vst [vmem:[#allocation7] sm:$0x1] %v59_v24  ;;  %70 = vst [vmem:[#allocation8] sm:$0x1] %v69_v25 }
  0x3d   :  { %162 = shalt.err (!%p159_p6)
}
  0x3e   :  { %s163_s17 = scalar_lea.hbm %s287_s2, 16 }
  0x3f   :  { %p164_p7 = scmp.ne.s32.totalorder %s287_s2, %s163_s17  ;;  %p167_p8 = scmp.lt.u32.totalorder %s163_s17, %s287_s2 }
  0x41   :  { %p169_p9 = pnand %p167_p8, %p164_p7 }
  0x43   :  { %172 = shalt.err (!%p169_p9)
}
  0x44   :  { %80 = dma.vmem_to_hbm [thread:$0]  %s78_s10, 16, %s287_s2, [#allocation4]  }
  0x45   :  { %s173_s24 = scalar_lea.vmem %s253_s12, 16  ;;  %s177_s25 = scalar_lea.vmem %s253_s12, 32 }
  0x46   :  { %p174_p10 = scmp.ne.s32.totalorder %s253_s12, %s173_s24  ;;  %p178_p11 = scmp.lt.s32.totalorder %s253_s12, %s253_s12 }
  0x47   :  { %p179_p12 = scmp.lt.s32.totalorder %s177_s25, %s173_s24 }
  0x49   :  { %p180_p13 = por %p179_p12, %p178_p11 }
  0x4b   :  { %p181_p0 = pnand %p180_p13, %p174_p10 }
  0x4d   :  { %184 = shalt.err (!%p181_p0)
}
  0x4e   :  { %s185_s28 = scalar_lea.hbm %s288_s3, 16 }
  0x4f   :  { %p186_p1 = scmp.ne.s32.totalorder %s288_s3, %s185_s28  ;;  %p189_p2 = scmp.lt.u32.totalorder %s185_s28, %s288_s3 }
  0x51   :  { %p191_p3 = pnand %p189_p2, %p186_p1 }
  0x53   :  { %194 = shalt.err (!%p191_p3)
}
  0x54   :  { %90 = dma.vmem_to_hbm [thread:$0]  %s253_s12, 16, %s288_s3, [#allocation9]  }
  0x55   :  { %199 = dma.done.wait [#allocation4], 16  }
  0x56   :  { %200 = vsyncadd [#allocation4], 4294967280 }
  0x57   :  { %201 = dma.done.wait [#allocation9], 16  }
  0x58   :  { %202 = vsyncadd [#allocation9], 4294967280 }
  0x59   :  { %97 = vsyncpa [#allocation3], 1 }
  0x5a   :  { %98 = vsyncpa [#allocation6], 1 }
  0x5b   :  { %99 = vsyncpa [#allocation4], 1 }
  0x5c   :  { %100 = vsyncpa [#allocation9], 1 }

</bundles_post_ra>
